<compile_context>
chip_gen: v7x
topology: tpu7x:2x2x1
jax: 0.10.0
libtpu: 0.0.40
codegen_flags: <defaults>
</compile_context>

<pallas_src>
import functools
import math

import jax
import jax.numpy as jnp
from jax.experimental import pallas as pl
from jax.experimental.pallas import tpu as pltpu

_VMEM_LIMIT = 32 * 1024 * 1024


# ----------------------------------------------------------------------------
# Pallas kernels
# ----------------------------------------------------------------------------
def _linear_kernel(x_ref, w_ref, b_ref, o_ref, acc_ref, *, act):
    """One (TM, TN) output tile, accumulated over the K grid axis."""
    @pl.when(pl.program_id(2) == 0)
    def _():
        acc_ref[...] = jnp.zeros_like(acc_ref)

    acc_ref[...] += jnp.dot(x_ref[...], w_ref[...],
                            preferred_element_type=jnp.float32)

    @pl.when(pl.program_id(2) == pl.num_programs(2) - 1)
    def _():
        y = acc_ref[...] + b_ref[...]           # f32 accumulator + f32 bias
        if act == "silu":                       # activations kept in f32 (v5e EUP/VPU)
            y = y * jax.nn.sigmoid(y)
        elif act == "gelu_tanh":
            c = jnp.float32(0.7978845608028654)  # sqrt(2/pi)
            y = 0.5 * y * (1.0 + jnp.tanh(c * (y + 0.044715 * y * y * y)))
        o_ref[...] = y.astype(o_ref.dtype)


def _linear_res_gate_kernel(x_ref, w_ref, b_ref, res_ref, gate_ref, o_ref, acc_ref):
    """out = residual + gate * (x @ w + b), fused epilogue. Grid=(B, L/TM, N/TN, K/TK)."""
    @pl.when(pl.program_id(3) == 0)
    def _():
        acc_ref[...] = jnp.zeros_like(acc_ref)

    acc_ref[...] += jnp.dot(x_ref[0], w_ref[...],
                            preferred_element_type=jnp.float32)

    @pl.when(pl.program_id(3) == pl.num_programs(3) - 1)
    def _():
        y = acc_ref[...] + b_ref[...]
        out = res_ref[0].astype(jnp.float32) + gate_ref[0].astype(jnp.float32) * y
        o_ref[0] = out.astype(o_ref.dtype)


def _ln_mod_kernel(x_ref, scale_ref, shift_ref, o_ref):
    """Fused LayerNorm(eps=1e-6, no affine) + (1+scale)*x + shift on a (1,TL,H) tile."""
    x = x_ref[...].astype(jnp.float32)
    mu = jnp.mean(x, axis=-1, keepdims=True)
    xc = x - mu
    var = jnp.mean(xc * xc, axis=-1, keepdims=True)
    xn = xc * jax.lax.rsqrt(var + 1e-6)
    y = (1.0 + scale_ref[...].astype(jnp.float32)) * xn + shift_ref[...].astype(jnp.float32)
    o_ref[...] = y.astype(o_ref.dtype)


def _flash_attn_kernel(q_ref, k_ref, v_ref, o_ref, m_ref, l_ref, acc_ref,
                       *, kv_len, block_kv, mask_pad):
    """Flash attention: online softmax, Q-tiled, KV-tiled 'arbitrary' grid axis.
    Softmax scale is folded into q (RMSNorm scale) before the kernel."""
    kv_i = pl.program_id(2)

    @pl.when(kv_i == 0)
    def _():
        m_ref[...] = jnp.full_like(m_ref, -1e30)
        l_ref[...] = jnp.zeros_like(l_ref)
        acc_ref[...] = jnp.zeros_like(acc_ref)

    q = q_ref[0]                                   # (TQ, D) bf16
    k = k_ref[0]                                   # (TKV, D) bf16
    v = v_ref[0]                                   # (TKV, D) bf16

    # No explicit k.T: contract the last axes of q and k on the MXU.
    s = jax.lax.dot_general(q, k, (((1,), (1,)), ((), ())),
                            preferred_element_type=jnp.float32)
    if mask_pad:                                   # mask padded keys (static check)
        col = jax.lax.broadcasted_iota(jnp.int32, s.shape, 1) + kv_i * block_kv
        s = jnp.where(col < kv_len, s, jnp.float32(-1e30))

    m_prev = m_ref[...]
    m_new = jnp.maximum(m_prev, jnp.max(s, axis=-1, keepdims=True))
    alpha = jnp.exp(m_prev - m_new)
    p = jnp.exp(s - m_new)
    l_ref[...] = alpha * l_ref[...] + jnp.sum(p, axis=-1, keepdims=True)
    acc_ref[...] = alpha * acc_ref[...] + jnp.dot(p.astype(jnp.bfloat16), v,
                                                  preferred_element_type=jnp.float32)
    m_ref[...] = m_new

    @pl.when(kv_i == pl.num_programs(2) - 1)
    def _():
        inv_l = pl.reciprocal(l_ref[...], approx=True)   # EUP slot, frees VPU
        o_ref[0] = (acc_ref[...] * inv_l).astype(o_ref.dtype)


# ----------------------------------------------------------------------------
# Pallas wrappers
# ----------------------------------------------------------------------------
def _round_up(x, m):
    return ((x + m - 1) // m) * m


def _pick_tile(n, candidates):
    for c in candidates:
        if n % c == 0:
            return c
    return n  # fall back to the full dimension (allowed when block == array dim)


def _to_bf16(a):
    return a if a.dtype == jnp.bfloat16 else a.astype(jnp.bfloat16)


def linear_pallas(x, w, b, act=None, out_dtype=jnp.float32):
    """y = act(x @ w + b); x: (..., K), w: (K, N) bf16, b: (N,). bf16 operands, f32 accum."""
    K = x.shape[-1]
    N = w.shape[-1]
    lead = x.shape[:-1]
    x2 = _to_bf16(x.reshape(-1, K))
    w2 = _to_bf16(w)
    b2 = b.reshape(1, N).astype(jnp.float32)
    M = x2.shape[0]

    TM = min(512, _round_up(M, 8))
    Mp = _round_up(M, TM)
    if Mp != M:
        x2 = jnp.pad(x2, ((0, Mp - M), (0, 0)))
    TN = _pick_tile(N, (1024, 512, 256, 128))
    TK = _pick_tile(K, (512, 256, 128))

    out = pl.pallas_call(
        functools.partial(_linear_kernel, act=act),
        out_shape=jax.ShapeDtypeStruct((Mp, N), out_dtype),
        grid=(Mp // TM, N // TN, K // TK),
        in_specs=[
            pl.BlockSpec((TM, TK), lambda i, j, k: (i, k)),
            pl.BlockSpec((TK, TN), lambda i, j, k: (k, j)),
            pl.BlockSpec((1, TN), lambda i, j, k: (0, j)),
        ],
        out_specs=pl.BlockSpec((TM, TN), lambda i, j, k: (i, j)),
        scratch_shapes=[pltpu.VMEM((TM, TN), jnp.float32)],
        compiler_params=pltpu.CompilerParams(
            dimension_semantics=("parallel", "parallel", "arbitrary"),
            vmem_limit_bytes=_VMEM_LIMIT),
    )(x2, w2, b2)
    if Mp != M:
        out = out[:M]
    return out.reshape(*lead, N)


def linear_res_gate_pallas(x, w, b, residual, gate, out_dtype=jnp.float32):
    """out = residual + gate[:,None,:] * (x @ w + b), fused in-kernel.
    x: (B,L,K), w: (K,N) bf16, b: (N,), residual: (B,L,N), gate: (B,N)."""
    B, L, K = x.shape
    N = w.shape[-1]
    xb = _to_bf16(x)
    wb = _to_bf16(w)
    b2 = b.reshape(1, N).astype(jnp.float32)
    g3 = gate.reshape(B, 1, N).astype(jnp.float32)
    res = residual.astype(jnp.float32)

    TM = min(512, _round_up(L, 8))
    Lp = _round_up(L, TM)
    if Lp != L:
        xb = jnp.pad(xb, ((0, 0), (0, Lp - L), (0, 0)))
        res = jnp.pad(res, ((0, 0), (0, Lp - L), (0, 0)))
    TN = _pick_tile(N, (1024, 512, 256, 128))
    TK = _pick_tile(K, (512, 256, 128))

    out = pl.pallas_call(
        _linear_res_gate_kernel,
        out_shape=jax.ShapeDtypeStruct((B, Lp, N), out_dtype),
        grid=(B, Lp // TM, N // TN, K // TK),
        in_specs=[
            pl.BlockSpec((1, TM, TK), lambda bb, i, j, k: (bb, i, k)),
            pl.BlockSpec((TK, TN), lambda bb, i, j, k: (k, j)),
            pl.BlockSpec((1, TN), lambda bb, i, j, k: (0, j)),
            pl.BlockSpec((1, TM, TN), lambda bb, i, j, k: (bb, i, j)),
            pl.BlockSpec((1, 1, TN), lambda bb, i, j, k: (bb, 0, j)),
        ],
        out_specs=pl.BlockSpec((1, TM, TN), lambda bb, i, j, k: (bb, i, j)),
        scratch_shapes=[pltpu.VMEM((TM, TN), jnp.float32)],
        compiler_params=pltpu.CompilerParams(
            dimension_semantics=("parallel", "parallel", "parallel", "arbitrary"),
            vmem_limit_bytes=_VMEM_LIMIT),
    )(xb, wb, b2, res, g3)
    return out[:, :L] if Lp != L else out


def ln_mod_pallas(x, scale, shift, out_dtype=jnp.bfloat16):
    """LayerNorm(no affine, eps=1e-6) then (1+scale)*x_norm + shift, tiled over sequence.
    x: (B, L, H); scale, shift: (B, 1, H)."""
    B, L, H = x.shape
    TL = min(256, _round_up(L, 8))
    Lp = _round_up(L, TL)
    xp = x if Lp == L else jnp.pad(x, ((0, 0), (0, Lp - L), (0, 0)))
    out = pl.pallas_call(
        _ln_mod_kernel,
        out_shape=jax.ShapeDtypeStruct((B, Lp, H), out_dtype),
        grid=(B, Lp // TL),
        in_specs=[
            pl.BlockSpec((1, TL, H), lambda b, l: (b, l, 0)),
            pl.BlockSpec((1, 1, H), lambda b, l: (b, 0, 0)),
            pl.BlockSpec((1, 1, H), lambda b, l: (b, 0, 0)),
        ],
        out_specs=pl.BlockSpec((1, TL, H), lambda b, l: (b, l, 0)),
        compiler_params=pltpu.CompilerParams(
            dimension_semantics=("parallel", "parallel"),
            vmem_limit_bytes=_VMEM_LIMIT),
    )(xp, scale, shift)
    return out[:, :L] if Lp != L else out


def attention_pallas(q, k, v, num_heads):
    """Flash attention per (batch*head), Q-tiled. q,k,v: (B, H, L, D).
    Returns (B, L, H*D) bf16 (heads merged inside the kernel's out BlockSpec when D%128==0)."""
    B, H, L, D = q.shape
    assert H == num_heads
    BH = B * H
    hidden = H * D
    qf = _to_bf16(q.reshape(BH, L, D))
    kf = _to_bf16(k.reshape(BH, L, D))
    vf = _to_bf16(v.reshape(BH, L, D))

    TQ = min(512, _round_up(L, 8))
    TKV = min(512, _round_up(L, 8))
    Lqp = _round_up(L, TQ)
    Lkvp = _round_up(L, TKV)
    if Lqp != L:
        qf = jnp.pad(qf, ((0, 0), (0, Lqp - L), (0, 0)))
    if Lkvp != L:
        kf = jnp.pad(kf, ((0, 0), (0, Lkvp - L), (0, 0)))
        vf = jnp.pad(vf, ((0, 0), (0, Lkvp - L), (0, 0)))

    merged = (D % 128 == 0)
    if merged:
        out_shape = jax.ShapeDtypeStruct((B, Lqp, hidden), jnp.bfloat16)
        out_spec = pl.BlockSpec((1, TQ, D), lambda bh, qi, kv: (bh // H, qi, bh % H))
    else:
        out_shape = jax.ShapeDtypeStruct((BH, Lqp, D), jnp.bfloat16)
        out_spec = pl.BlockSpec((1, TQ, D), lambda bh, qi, kv: (bh, qi, 0))

    out = pl.pallas_call(
        functools.partial(_flash_attn_kernel, kv_len=L, block_kv=TKV,
                          mask_pad=(Lkvp != L)),
        out_shape=out_shape,
        grid=(BH, Lqp // TQ, Lkvp // TKV),
        in_specs=[
            pl.BlockSpec((1, TQ, D), lambda bh, qi, kv: (bh, qi, 0)),
            pl.BlockSpec((1, TKV, D), lambda bh, qi, kv: (bh, kv, 0)),
            pl.BlockSpec((1, TKV, D), lambda bh, qi, kv: (bh, kv, 0)),
        ],
        out_specs=out_spec,
        scratch_shapes=[
            pltpu.VMEM((TQ, 1), jnp.float32),   # running max
            pltpu.VMEM((TQ, 1), jnp.float32),   # running sum
            pltpu.VMEM((TQ, D), jnp.float32),   # output accumulator
        ],
        compiler_params=pltpu.CompilerParams(
            dimension_semantics=("parallel", "parallel", "arbitrary"),
            vmem_limit_bytes=_VMEM_LIMIT),
    )(qf, kf, vf)

    if merged:
        return out[:, :L] if Lqp != L else out
    # Fallback for D not a multiple of 128 (head merge done in XLA).
    out = out[:, :L].reshape(B, H, L, D).transpose(0, 2, 1, 3).reshape(B, L, hidden)
    return out


def conv3x3_xla(x_nhwc, w, b, stride, act):
    """3x3 conv, padding=1 (torch-style symmetric). Cout=16 is lane-starved on the MXU,
    so the tiny hint block is left to XLA's conv (per perf review)."""
    y = jax.lax.conv_general_dilated(
        x_nhwc.astype(jnp.float32), w.astype(jnp.float32),
        window_strides=(stride, stride), padding=((1, 1), (1, 1)),
        dimension_numbers=("NHWC", "OIHW", "NHWC"))
    y = y + b[None, None, None, :]
    if act == "silu":
        y = jax.nn.silu(y)
    return y


# ----------------------------------------------------------------------------
# Plain-JAX helper math (tiny glue kept in XLA on purpose)
# ----------------------------------------------------------------------------
def timestep_embedding(t, dim, max_period=10000, time_factor=1000.0):
    t = time_factor * t.astype(jnp.float32)
    half = dim // 2
    freqs = jnp.exp(-math.log(max_period) * jnp.arange(half, dtype=jnp.float32) / half)
    args = t[:, None] * freqs[None, :]
    return jnp.concatenate([jnp.cos(args), jnp.sin(args)], axis=-1)


def rope_jax(pos, dim, theta):
    scale = jnp.arange(0, dim, 2, dtype=jnp.float32) / dim
    omega = 1.0 / (theta ** scale)
    out = pos.astype(jnp.float32)[..., None] * omega           # (B, L, dim/2)
    cos, sin = jnp.cos(out), jnp.sin(out)
    mat = jnp.stack([cos, -sin, sin, cos], axis=-1)
    return mat.reshape(*mat.shape[:-1], 2, 2)                   # (B, L, dim/2, 2, 2)


def embed_nd(ids, axes_dim, theta):
    embs = [rope_jax(ids[..., i], axes_dim[i], theta) for i in range(ids.shape[-1])]
    return jnp.concatenate(embs, axis=-3)[:, None]              # (B, 1, L, pe/2, 2, 2)


# TODO(synk): fuse rms_norm + apply_rope + head split into the attention kernel's
#             q/k prologue (interleaved-pair rotation needs lane shuffles).
def apply_rope(xq, xk, freqs_cis):
    xq_ = xq.reshape(*xq.shape[:-1], -1, 1, 2)
    xk_ = xk.reshape(*xk.shape[:-1], -1, 1, 2)
    xq_out = freqs_cis[..., 0] * xq_[..., 0] + freqs_cis[..., 1] * xq_[..., 1]
    xk_out = freqs_cis[..., 0] * xk_[..., 0] + freqs_cis[..., 1] * xk_[..., 1]
    return xq_out.reshape(xq.shape), xk_out.reshape(xk.shape)


def rms_norm(x, scale):
    xf = x.astype(jnp.float32)
    rrms = jax.lax.rsqrt(jnp.mean(xf * xf, axis=-1, keepdims=True) + 1e-6)
    return xf * rrms * scale


def mlp_embedder(x, p):
    # M = batch (2..8 rows): a Pallas launch would leave the MXU ~empty -> plain XLA.
    h = jax.nn.silu(x.astype(jnp.float32) @ p["w1"] + p["b1"])
    return h @ p["w2"] + p["b2"]


# ----------------------------------------------------------------------------
# DoubleStreamBlock
# ----------------------------------------------------------------------------
def double_stream_block(p, img, txt, vec, pe, num_heads):
    B, L_img, hidden = img.shape
    L_txt = txt.shape[1]
    D = hidden // num_heads
    sm_scale = 1.0 / math.sqrt(D)

    # img_mod & txt_mod share the same silu(vec) input -> one fused projection.
    svec = jax.nn.silu(vec)
    mod = linear_pallas(svec, p["mod_w"], p["mod_b"])            # (B, 12*hidden)
    img_mod, txt_mod = jnp.split(mod, 2, axis=-1)
    (im_sh1, im_sc1, im_g1, im_sh2, im_sc2, im_g2) = jnp.split(img_mod, 6, axis=-1)
    (tx_sh1, tx_sc1, tx_g1, tx_sh2, tx_sc2, tx_g2) = jnp.split(txt_mod, 6, axis=-1)

    def qkv_heads(x, shift, scale, qkv_w, qkv_b, qs, ks):
        xm = ln_mod_pallas(x, scale[:, None, :], shift[:, None, :])          # bf16
        qkv = linear_pallas(xm, qkv_w, qkv_b, out_dtype=jnp.bfloat16)        # (B,L,3*hidden)
        L = x.shape[1]
        qkv = qkv.reshape(B, L, 3, num_heads, D).transpose(2, 0, 3, 1, 4)
        q, k, v = qkv[0], qkv[1], qkv[2]
        # 1/sqrt(D) folded into the q RMSNorm scale (rotation commutes with scalars).
        return rms_norm(q, qs * sm_scale), rms_norm(k, ks), v

    img_q, img_k, img_v = qkv_heads(img, im_sh1, im_sc1, p["img_qkv_w"],
                                    p["img_qkv_b"], p["img_q_scale"], p["img_k_scale"])
    txt_q, txt_k, txt_v = qkv_heads(txt, tx_sh1, tx_sc1, p["txt_qkv_w"],
                                    p["txt_qkv_b"], p["txt_q_scale"], p["txt_k_scale"])

    q = jnp.concatenate([txt_q, img_q], axis=2)
    k = jnp.concatenate([txt_k, img_k], axis=2)
    v = jnp.concatenate([txt_v, img_v], axis=2)
    q, k = apply_rope(q, k, pe)

    attn = attention_pallas(q, k, v, num_heads)                  # (B, Lt+Li, hidden) bf16
    txt_attn, img_attn = attn[:, :L_txt], attn[:, L_txt:]

    # residual + gate * proj fused into the linear epilogue
    img = linear_res_gate_pallas(img_attn, p["img_proj_w"], p["img_proj_b"],
                                 residual=img, gate=im_g1)
    img_mlp_in = ln_mod_pallas(img, im_sc2[:, None, :], im_sh2[:, None, :])
    img_h0 = linear_pallas(img_mlp_in, p["img_mlp0_w"], p["img_mlp0_b"],
                           act="gelu_tanh", out_dtype=jnp.bfloat16)
    img = linear_res_gate_pallas(img_h0, p["img_mlp2_w"], p["img_mlp2_b"],
                                 residual=img, gate=im_g2)

    txt = linear_res_gate_pallas(txt_attn, p["txt_proj_w"], p["txt_proj_b"],
                                 residual=txt, gate=tx_g1)
    txt_mlp_in = ln_mod_pallas(txt, tx_sc2[:, None, :], tx_sh2[:, None, :])
    txt_h0 = linear_pallas(txt_mlp_in, p["txt_mlp0_w"], p["txt_mlp0_b"],
                           act="gelu_tanh", out_dtype=jnp.bfloat16)
    txt = linear_res_gate_pallas(txt_h0, p["txt_mlp2_w"], p["txt_mlp2_b"],
                                 residual=txt, gate=tx_g2)
    return img, txt


# ----------------------------------------------------------------------------
# ControlNetFlux forward
# ----------------------------------------------------------------------------
def controlnet_flux_forward(params, cfg, img, img_ids, controlnet_cond, txt, txt_ids,
                            timesteps, y, guidance, guided_hint):
    assert img.ndim == 3 and txt.ndim == 3
    num_heads = cfg["num_heads"]
    hidden = cfg["hidden_size"]
    B, L_img, _ = img.shape

    # Reference does img = img_in(zeros_like(img)) -> structurally the bias broadcast.
    img_h = jnp.broadcast_to(params["img_in_b"].astype(jnp.float32)[None, None, :],
                             (B, L_img, hidden))

    # input_hint_block: 8 x conv3x3 (+SiLU except last), strides [1,1,2,1,2,1,2,1]
    strides = [1, 1, 2, 1, 2, 1, 2, 1]
    x = jnp.transpose(controlnet_cond, (0, 2, 3, 1))                 # NCHW -> NHWC
    for idx, (cw, cb) in enumerate(params["hint_convs"]):
        act = "silu" if idx < 7 else None
        x = conv3x3_xla(x, cw, cb, stride=strides[idx], act=act)
    cc = jnp.transpose(x, (0, 3, 1, 2))                              # back to NCHW

    # rearrange 'b c (h ph) (w pw) -> b (h w) (c ph pw)', ph=pw=2
    Bc, Cc, Hc, Wc = cc.shape
    h, w = Hc // 2, Wc // 2
    cc = cc.reshape(Bc, Cc, h, 2, w, 2).transpose(0, 2, 4, 1, 3, 5).reshape(Bc, h * w, Cc * 4)
    cc = linear_pallas(cc, params["pos_embed_w"], params["pos_embed_b"])
    img_h = img_h + cc

    # guided hint: rearrange 'b c (ph h) (pw w) -> b (h w) (c ph pw)', ph=pw=2
    gb, gc, ghh, gww = guided_hint.shape
    h2, w2 = ghh // 2, gww // 2
    gh = guided_hint.reshape(gb, gc, 2, h2, 2, w2).transpose(0, 3, 5, 1, 2, 4)
    gh = gh.reshape(gb, h2 * w2, gc * 4).astype(jnp.bfloat16)        # mimic .bfloat16() cast
    img_h = img_h + linear_pallas(gh, params["ghint_w"], params["ghint_b"])

    # vec (tiny M=B path, plain XLA)
    timesteps0 = jnp.zeros((timesteps.shape[0],), jnp.float32)       # forward zeroes timesteps
    vec = mlp_embedder(timestep_embedding(timesteps0, 256), params["time_in"])
    if cfg["guidance_embed"]:
        vec = vec + mlp_embedder(timestep_embedding(guidance, 256), params["guidance_in"])
    vec = vec + mlp_embedder(y, params["vector_in"])

    txt_h = linear_pallas(txt, params["txt_in_w"], params["txt_in_b"])

    ids = jnp.concatenate([txt_ids, img_ids], axis=1)
    pe = embed_nd(ids, cfg["axes_dim"], cfg["theta"])

    block_res = []
    for bp in params["double_blocks"]:
        img_h, txt_h = double_stream_block(bp, img_h, txt_h, vec, pe, num_heads)
        block_res.append(img_h)

    outs = []
    for sample, (cw, cb) in zip(block_res, params["controlnet_blocks"]):
        outs.append(linear_pallas(sample, cw, cb))                   # zero-init -> zeros
    return tuple(outs)


# ----------------------------------------------------------------------------
# Deterministic parameter init (shapes per ControlNetFlux.__init__)
# Matmul weights are stored in bf16 ONCE here (no per-call cast); biases stay f32.
# ----------------------------------------------------------------------------
def init_params(key, cfg):
    keys = iter(jax.random.split(key, 256))
    hidden = cfg["hidden_size"]
    head_dim = hidden // cfg["num_heads"]
    mlp_hidden = int(hidden * cfg["mlp_ratio"])

    def lin(kin, kout, zero=False):
        if zero:
            return jnp.zeros((kin, kout), jnp.bfloat16), jnp.zeros((kout,), jnp.float32)
        w = (jax.random.normal(next(keys), (kin, kout), jnp.float32) * 0.02).astype(jnp.bfloat16)
        b = jax.random.normal(next(keys), (kout,), jnp.float32) * 0.02
        return w, b

    def lin_f32(kin, kout):
        w = jax.random.normal(next(keys), (kin, kout), jnp.float32) * 0.02
        b = jax.random.normal(next(keys), (kout,), jnp.float32) * 0.02
        return w, b

    def conv(cin, cout, zero=False):
        if zero:
            return jnp.zeros((cout, cin, 3, 3), jnp.float32), jnp.zeros((cout,), jnp.float32)
        w = jax.random.normal(next(keys), (cout, cin, 3, 3), jnp.float32) * 0.05
        b = jax.random.normal(next(keys), (cout,), jnp.float32) * 0.02
        return w, b

    def mlp_emb(kin):
        w1, b1 = lin_f32(kin, hidden)
        w2, b2 = lin_f32(hidden, hidden)
        return {"w1": w1, "b1": b1, "w2": w2, "b2": b2}

    def dblock():
        p = {}
        imw, imb = lin(hidden, 6 * hidden)
        tmw, tmb = lin(hidden, 6 * hidden)
        # fuse img_mod / txt_mod weights along N (same silu(vec) input)
        p["mod_w"] = jnp.concatenate([imw, tmw], axis=1)
        p["mod_b"] = jnp.concatenate([imb, tmb], axis=0)
        p["img_qkv_w"], p["img_qkv_b"] = lin(hidden, 3 * hidden)
        p["txt_qkv_w"], p["txt_qkv_b"] = lin(hidden, 3 * hidden)
        p["img_q_scale"] = jnp.ones((head_dim,), jnp.float32)
        p["img_k_scale"] = jnp.ones((head_dim,), jnp.float32)
        p["txt_q_scale"] = jnp.ones((head_dim,), jnp.float32)
        p["txt_k_scale"] = jnp.ones((head_dim,), jnp.float32)
        p["img_proj_w"], p["img_proj_b"] = lin(hidden, hidden)
        p["txt_proj_w"], p["txt_proj_b"] = lin(hidden, hidden)
        p["img_mlp0_w"], p["img_mlp0_b"] = lin(hidden, mlp_hidden)
        p["img_mlp2_w"], p["img_mlp2_b"] = lin(mlp_hidden, hidden)
        p["txt_mlp0_w"], p["txt_mlp0_b"] = lin(hidden, mlp_hidden)
        p["txt_mlp2_w"], p["txt_mlp2_b"] = lin(mlp_hidden, hidden)
        return p

    params = {}
    params["img_in_w"], params["img_in_b"] = lin(cfg["in_channels"], hidden)
    params["time_in"] = mlp_emb(256)
    params["ghint_w"], params["ghint_b"] = lin(1280, hidden)
    params["vector_in"] = mlp_emb(cfg["vec_in_dim"])
    params["guidance_in"] = mlp_emb(256) if cfg["guidance_embed"] else None
    params["txt_in_w"], params["txt_in_b"] = lin(cfg["context_in_dim"], hidden)
    params["pos_embed_w"], params["pos_embed_b"] = lin(cfg["in_channels"], hidden)
    params["double_blocks"] = [dblock() for _ in range(cfg["controlnet_depth"])]
    # zero_module(nn.Linear(hidden, hidden)) -> zero weights & bias
    params["controlnet_blocks"] = [lin(hidden, hidden, zero=True)
                                   for _ in range(cfg["controlnet_depth"])]
    # input_hint_block convs; last one is zero_module'd
    chans = [(3, 16)] + [(16, 16)] * 7
    params["hint_convs"] = [conv(ci, co, zero=(i == 7)) for i, (ci, co) in enumerate(chans)]
    return params


# ----------------------------------------------------------------------------
# Main
# ----------------------------------------------------------------------------
if __name__ == "__main__":
    cfg = dict(
        in_channels=64,           # must equal 16*2*2 (hint-block channels * patch)
        vec_in_dim=32,
        context_in_dim=32,
        hidden_size=256,
        mlp_ratio=2.0,
        num_heads=2,
        axes_dim=[32, 48, 48],    # sum == hidden/num_heads == 128
        theta=10000,
        qkv_bias=True,
        guidance_embed=True,
        controlnet_depth=2,
    )

    key = jax.random.PRNGKey(0)
    kp, kd = jax.random.split(key)
    params = init_params(kp, cfg)

    B, L_img, L_txt = 2, 16, 8
    dkeys = jax.random.split(kd, 6)

    img = jax.random.normal(dkeys[0], (B, L_img, cfg["in_channels"]), jnp.float32)
    hh = ww = 4                                        # 4x4 latent grid -> L_img = 16
    row = jnp.tile(jnp.arange(hh, dtype=jnp.float32)[:, None], (1, ww))
    col = jnp.tile(jnp.arange(ww, dtype=jnp.float32)[None, :], (hh, 1))
    img_ids = jnp.stack([jnp.zeros((hh, ww)), row, col], axis=-1).reshape(1, L_img, 3)
    img_ids = jnp.tile(img_ids, (B, 1, 1)).astype(jnp.float32)
    txt_ids = jnp.zeros((B, L_txt, 3), jnp.float32)

    controlnet_cond = jax.random.normal(dkeys[1], (B, 3, 64, 64), jnp.float32)   # NCHW
    txt = jax.random.normal(dkeys[2], (B, L_txt, cfg["context_in_dim"]), jnp.float32)
    timesteps = jax.random.uniform(dkeys[3], (B,), jnp.float32)
    y = jax.random.normal(dkeys[4], (B, cfg["vec_in_dim"]), jnp.float32)
    guidance = jnp.full((B,), 4.0, jnp.float32)
    guided_hint = jax.random.normal(dkeys[5], (B, 320, 8, 8), jnp.float32)       # NCHW

    outs = controlnet_flux_forward(params, cfg, img, img_ids, controlnet_cond,
                                   txt, txt_ids, timesteps, y, guidance, guided_hint)
    outs = jax.block_until_ready(outs)

    assert len(outs) == cfg["controlnet_depth"]
    for o in outs:
        assert o.shape == (B, L_img, cfg["hidden_size"])
        assert bool(jnp.all(jnp.isfinite(o)))
    print("KERNEL_OK")
</pallas_src>

<mosaic_0001>
module attributes {stable_mosaic.version = 11 : i64} {
  func.func @_linear_kernel(%arg0: i32, %arg1: i32, %arg2: i32, %arg3: memref<32x64xbf16, #tpu.memory_space<vmem>>, %arg4: memref<64x256xbf16, #tpu.memory_space<vmem>>, %arg5: memref<1x256xf32, #tpu.memory_space<vmem>>, %arg6: memref<32x256xf32, #tpu.memory_space<vmem>>, %arg7: memref<32x256xf32, #tpu.memory_space<vmem>>) attributes {dimension_semantics = [#tpu.dimension_semantics<parallel>, #tpu.dimension_semantics<parallel>, #tpu.dimension_semantics<arbitrary>], iteration_bounds = array<i64: 1, 1, 1>, scalar_prefetch = 0 : i64, scratch_operands = 1 : i64, tpu.core_type = #tpu.core_type<tc>, window_params = [{transform_indices = @transform_0, window_bounds = array<i64: 32, 64>}, {transform_indices = @transform_1, window_bounds = array<i64: 64, 256>}, {transform_indices = @transform_2, window_bounds = array<i64: 1, 256>}, {transform_indices = @transform_3, window_bounds = array<i64: 32, 256>}]} {
    %c0_i32 = arith.constant 0 : i32
    %0 = arith.cmpi eq, %arg2, %c0_i32 : i32
    %1 = arith.extui %0 : i1 to i32
    %c0_i32_0 = arith.constant 0 : i32
    %2 = arith.cmpi ne, %1, %c0_i32_0 : i32
    scf.if %2 {
      %cst_10 = arith.constant 0.000000e+00 : f32
      %12 = vector.broadcast %cst_10 : f32 to vector<32x256xf32>
      %c0_11 = arith.constant 0 : index
      %c0_12 = arith.constant 0 : index
      %13 = vector.load %arg7[%c0_11, %c0_12] : memref<32x256xf32, #tpu.memory_space<vmem>>, vector<32x256xf32>
      tpu.vector_store %arg7[%c0_11, %c0_12], %12 {strides = array<i32>} : memref<32x256xf32, #tpu.memory_space<vmem>>, vector<32x256xf32>,
    } else {
    }
    %c0 = arith.constant 0 : index
    %c0_1 = arith.constant 0 : index
    %3 = vector.load %arg7[%c0, %c0_1] : memref<32x256xf32, #tpu.memory_space<vmem>>, vector<32x256xf32>
    %c0_2 = arith.constant 0 : index
    %c0_3 = arith.constant 0 : index
    %4 = vector.load %arg3[%c0_2, %c0_3] : memref<32x64xbf16, #tpu.memory_space<vmem>>, vector<32x64xbf16>
    %c0_4 = arith.constant 0 : index
    %c0_5 = arith.constant 0 : index
    %5 = vector.load %arg4[%c0_4, %c0_5] : memref<64x256xbf16, #tpu.memory_space<vmem>>, vector<64x256xbf16>
    %cst = arith.constant dense<0.000000e+00> : vector<32x256xf32>
    %6 = tpu.matmul %4, %5, %cst {dimension_numbers = #tpu.dot_dimension_numbers<[1], [0], [0], [1], [0, 0, 1, 1], [], []>} : vector<32x64xbf16>, vector<64x256xbf16>, vector<32x256xf32> -> vector<32x256xf32>
    %7 = arith.addf %3, %6 : vector<32x256xf32>
    %c0_6 = arith.constant 0 : index
    %c0_7 = arith.constant 0 : index
    %8 = vector.load %arg7[%c0_6, %c0_7] : memref<32x256xf32, #tpu.memory_space<vmem>>, vector<32x256xf32>
    tpu.vector_store %arg7[%c0_6, %c0_7], %7 {strides = array<i32>} : memref<32x256xf32, #tpu.memory_space<vmem>>, vector<32x256xf32>,
    %c0_i32_8 = arith.constant 0 : i32
    %9 = arith.cmpi eq, %arg2, %c0_i32_8 : i32
    %10 = arith.extui %9 : i1 to i32
    %c0_i32_9 = arith.constant 0 : i32
    %11 = arith.cmpi ne, %10, %c0_i32_9 : i32
    scf.if %11 {
      %c0_10 = arith.constant 0 : index
      %c0_11 = arith.constant 0 : index
      %12 = vector.load %arg7[%c0_10, %c0_11] : memref<32x256xf32, #tpu.memory_space<vmem>>, vector<32x256xf32>
      %c0_12 = arith.constant 0 : index
      %c0_13 = arith.constant 0 : index
      %13 = vector.load %arg5[%c0_12, %c0_13] : memref<1x256xf32, #tpu.memory_space<vmem>>, vector<1x256xf32>
      %14 = vector.broadcast %13 : vector<1x256xf32> to vector<32x256xf32>
      %15 = arith.addf %12, %14 : vector<32x256xf32>
      %c0_14 = arith.constant 0 : index
      %c0_15 = arith.constant 0 : index
      %16 = vector.load %arg6[%c0_14, %c0_15] : memref<32x256xf32, #tpu.memory_space<vmem>>, vector<32x256xf32>
      tpu.vector_store %arg6[%c0_14, %c0_15], %15 {strides = array<i32>} : memref<32x256xf32, #tpu.memory_space<vmem>>, vector<32x256xf32>,
    } else {
    }
    return
  }
  func.func @transform_0(%arg0: i32, %arg1: i32, %arg2: i32) -> (i32, i32) {
    %c0_i32 = arith.constant 0 : i32
    return %arg0, %arg2 : i32, i32
  }
  func.func @transform_1(%arg0: i32, %arg1: i32, %arg2: i32) -> (i32, i32) {
    %c0_i32 = arith.constant 0 : i32
    return %arg2, %arg1 : i32, i32
  }
  func.func @transform_2(%arg0: i32, %arg1: i32, %arg2: i32) -> (i32, i32) {
    %c0_i32 = arith.constant 0 : i32
    %c0_i32_0 = arith.constant 0 : i32
    return %c0_i32, %arg1 : i32, i32
  }
  func.func @transform_3(%arg0: i32, %arg1: i32, %arg2: i32) -> (i32, i32) {
    %c0_i32 = arith.constant 0 : i32
    return %arg0, %arg1 : i32, i32
  }
}

</mosaic_0001>

<bundles_post_ra>
// kernel: tpu_custom_call.1
= control target key start
LH: loop header
LB: loop body
LE: loop exit
PB: predicated region body
PF: predicated region fallthrough
CT: control target
= control target key end

     0   :  { %8 = vsyncpa [#allocation4], 0  ;;  %s444_s0 = inlined_call_operand.hbm [shape: bf16[32,64], index: 0, kind: input, shape index: {}]   ;;  %s445_s1 = inlined_call_operand.hbm [shape: bf16[64,256], index: 1, kind: input, shape index: {}]   ;;  %s446_s2 = inlined_call_operand.vmem [shape: f32[1,256], index: 2, kind: input, shape index: {}]   ;;  %s447_s3 = inlined_call_operand.hbm [shape: f32[32,256], index: 3, kind: output, shape index: {}]  }
   0x1   :  { %9 = vsyncpa [#allocation7], 0 }
   0x2   :  { %10 = vsyncpa [#allocation5], 0  ;;  %s375_s12 = smov [#allocation3]   ;;  %s303_s16 = scalar_lea.hbm %s444_s0, 256 }
   0x3   :  { %s16_s13 = sshll.u32 %s375_s12, 4  ;;  %p304_p0 = scmp.ne.s32.totalorder %s444_s0, %s303_s16  ;;  %s17_s13 = int_to_ptr.vmem [resolvable:$true] %s16_s13 }
   0x4   :  { %p307_p1 = scmp.lt.u32.totalorder %s303_s16, %s444_s0 }
   0x6   :  { %p309_p2 = pnand %p307_p1, %p304_p0 }
   0x8   :  { %312 = shalt.err (!%p309_p2)
}
   0x9   :  { %s313_s21 = scalar_lea.vmem %s17_s13, 256  ;;  %p318_p4 = scmp.lt.s32.totalorder %s17_s13, %s17_s13 }
   0xa   :  { %p314_p3 = scmp.ne.s32.totalorder %s17_s13, %s313_s21  ;;  %p319_p5 = scmp.lt.s32.totalorder %s313_s21, %s313_s21 }
   0xc   :  { %p320_p6 = por %p319_p5, %p318_p4 }
   0xe   :  { %p321_p7 = pnand %p320_p6, %p314_p3 }
  0x10   :  { %324 = shalt.err (!%p321_p7)
}
  0x11   :  { %s376_s22 = smov 64   ;;  %s377_s23 = smov 4  }
  0x12   :  { %22 = dma.hbm_to_vmem [thread:$0]  %s444_s0, 256, %s17_s13, [#allocation4], %s376_s22, %s376_s22, %s377_s23  }
  0x13   :  { %s378_s26 = smov [#allocation6]   ;;  %s325_s30 = scalar_lea.hbm %s445_s1, 1024 }
  0x14   :  { %s28_s27 = sshll.u32 %s378_s26, 4  ;;  %p326_p8 = scmp.ne.s32.totalorder %s445_s1, %s325_s30  ;;  %s29_s27 = int_to_ptr.vmem [resolvable:$true] %s28_s27 }
  0x15   :  { %p329_p9 = scmp.lt.u32.totalorder %s325_s30, %s445_s1 }
  0x17   :  { %p331_p10 = pnand %p329_p9, %p326_p8 }
  0x19   :  { %334 = shalt.err (!%p331_p10)
}
  0x1a   :  { %s335_s8 = scalar_lea.vmem %s29_s27, 1024  ;;  %p340_p12 = scmp.lt.s32.totalorder %s29_s27, %s29_s27 }
  0x1b   :  { %p336_p11 = scmp.ne.s32.totalorder %s29_s27, %s335_s8  ;;  %p341_p13 = scmp.lt.s32.totalorder %s335_s8, %s335_s8 }
  0x1d   :  { %p342_p0 = por %p341_p13, %p340_p12 }
  0x1f   :  { %p343_p1 = pnand %p342_p0, %p336_p11 }
  0x21   :  { %346 = shalt.err (!%p343_p1)
}
  0x22   :  { %s379_s0 = smov 128   ;;  %s380_s9 = smov 8  }
  0x23   :  { %34 = dma.hbm_to_vmem [thread:$0]  %s445_s1, 1024, %s29_s27, [#allocation7], %s379_s0, %s379_s0, %s380_s9  }
  0x24   :  { %369 = dma.done.wait [#allocation4], 256  }
  0x25   :  { %370 = vsyncadd [#allocation4], 4294967040 }
  0x26   :  { %371 = dma.done.wait [#allocation7], 1024  }
  0x27   :  { %372 = vsyncadd [#allocation7], 4294966272  ;;  %v381_v0 = vmov 0   ;;  %v289_v1 = vld [vmem:[#allocation6 + $0x4] ss:$8 sps:$4 sm:$0xff]   ;;  %v301_v9 = vld [vmem:[#allocation3] sm:$0xff]   ;;  %v215_v11 = vlaneseq }
  0x28   :  { %165 = vmatprep.mubr.bf16.mxu0 %v381_v0  ;;  %175 = vmatprep.mubr.bf16.mxu1 %v381_v0  ;;  %v291_v2 = vld [vmem:[#allocation6] ss:$8 sps:$4 sm:$0xff]   ;;  %v292_v3 = vld [vmem:[#allocation6 + $0x14] ss:$8 sps:$4 sm:$0xff]   ;;  %v294_v4 = vld [vmem:[#allocation6 + $0x10] ss:$8 sps:$4 sm:$0xff]  }
  0x29   :  { %133 = vmatprep.subr.bf16.mxu0 %v289_v1  ;;  %271 = vmatprep.subr.bf16.mxu1 %v289_v1  ;;  %v295_v5 = vld [vmem:[#allocation6 + $0x24] ss:$8 sps:$4 sm:$0xff]   ;;  %v297_v6 = vld [vmem:[#allocation6 + $0x20] ss:$8 sps:$4 sm:$0xff]   ;;  %v298_v7 = vld [vmem:[#allocation6 + $0x34] ss:$8 sps:$4 sm:$0xff]  }
  0x2a   :  { %134 = vmatpush1.bf16.msra.mxu0 %v291_v2  ;;  %275 = vmatpush1.bf16.msra.mxu1 %v291_v2  ;;  %v300_v8 = vld [vmem:[#allocation6 + $0x30] ss:$8 sps:$4 sm:$0xff]   ;;  %vm126_vm0 = vcmask 523264   ;;  %v216_v12 = vshrl.u32 %v215_v11, 7  ;;  %s382_s13 = smov [#allocation8]  }
  0x2b   :  { %135 = vmatprep.subr.bf16.mxu0 %v292_v3  ;;  %272 = vmatprep.subr.bf16.mxu1 %v292_v3  ;;  %v302_v10 = vld [vmem:[#allocation3 + $0x8] sm:$0xff]   ;;  %v213_v14 = vld [vmem:[%s446_s2] sm:$0x3]  ;;  %s246_s14 = sshll.u32 %s382_s13, 4  ;;  %s247_s14 = int_to_ptr.vmem [resolvable:$true] %s246_s14 }
  0x2c   :  { %v217_v13 = vsub.s32 0, %v216_v12  ;;  %v221_v15 = vsub.s32 1, %v216_v12  ;;  %s347_s2 = scalar_lea.vmem %s247_s14, 1024  ;;  %p352_p3 = scmp.lt.s32.totalorder %s247_s14, %s247_s14 }
  0x2d   :  { %p348_p2 = scmp.ne.s32.totalorder %s247_s14, %s347_s2  ;;  %p353_p4 = scmp.lt.s32.totalorder %s347_s2, %s347_s2 }
  0x2e   :  { %136 = vmatpush1.bf16.msra.mxu0 %v294_v4  ;;  %276 = vmatpush1.bf16.msra.mxu1 %v294_v4  ;;  %v218_v16 = vrot.slane %v213_v14, %v217_v13  ;;  %v222_v17 = vrot.slane %v213_v14, %v221_v15 }
  0x2f   :  { %137 = vmatprep.subr.bf16.mxu0 %v295_v5  ;;  %273 = vmatprep.subr.bf16.mxu1 %v295_v5  ;;  %p354_p5 = por %p353_p4, %p352_p3 }
  0x31   :  { %p355_p6 = pnand %p354_p5, %p348_p2 }
  0x32   :  { %138 = vmatpush1.bf16.msra.mxu0 %v297_v6  ;;  %277 = vmatpush1.bf16.msra.mxu1 %v297_v6 }
  0x33   :  { %139 = vmatprep.subr.bf16.mxu0 %v298_v7  ;;  %274 = vmatprep.subr.bf16.mxu1 %v298_v7 }
  0x36   :  { %140 = vmatpush1.bf16.msra.mxu0 %v300_v8  ;;  %278 = vmatpush1.bf16.msra.mxu1 %v300_v8 }
  0x39   :  { %269 = vmatmul.mubr.msk.bf16.vlgmr.msra.gmra.mrb[0].mxu0 %vm126_vm0, %v301_v9  ;;  %270 = vmatmul.mubr.msk.bf16.vlgmr.msra.gmra.mrb[0].mxu1 %vm126_vm0, %v302_v10 }
 0x10c   :  { %v167_v18 = vpop.f32.mrb[0].mxu0  ;;  %v177_v19 = vpop.f32.mrb[0].mxu1 }
 0x10d   :  { %v225_v20 = vadd.f32 %v218_v16, %v167_v18  ;;  %v229_v21 = vadd.f32 %v218_v16, %v177_v19  ;;  %v169_v22 = vpop.f32.mrb[1].mxu0  ;;  %v179_v23 = vpop.f32.mrb[1].mxu1 }
 0x10e   :  { %v226_v24 = vadd.f32 %v222_v17, %v169_v22  ;;  %v230_v25 = vadd.f32 %v222_v17, %v179_v23  ;;  %v171_v26 = vpop.f32.mrb[2].mxu0  ;;  %v181_v27 = vpop.f32.mrb[2].mxu1 }
 0x10f   :  { %233 = vst [vmem:[#allocation8] sm:$0xff] %v225_v20  ;;  %237 = vst [vmem:[#allocation8 + $0x20] sm:$0xff] %v229_v21  ;;  %v227_v28 = vadd.f32 %v218_v16, %v171_v26  ;;  %v231_v29 = vadd.f32 %v218_v16, %v181_v27  ;;  %v173_v30 = vpop.f32.mrb[3].mxu0  ;;  %v183_v31 = vpop.f32.mrb[3].mxu1 }
 0x110   :  { %234 = vst [vmem:[#allocation8 + $0x8] sm:$0xff] %v226_v24  ;;  %238 = vst [vmem:[#allocation8 + $0x28] sm:$0xff] %v230_v25  ;;  %v228_v32 = vadd.f32 %v222_v17, %v173_v30  ;;  %v232_v33 = vadd.f32 %v222_v17, %v183_v31 }
 0x111   :  { %235 = vst [vmem:[#allocation8 + $0x10] sm:$0xff] %v227_v28  ;;  %239 = vst [vmem:[#allocation8 + $0x30] sm:$0xff] %v231_v29 }
 0x112   :  { %236 = vst [vmem:[#allocation8 + $0x18] sm:$0xff] %v228_v32  ;;  %240 = vst [vmem:[#allocation8 + $0x38] sm:$0xff] %v232_v33 }
 0x113   :  { %358 = shalt.err (!%p355_p6)
}
 0x114   :  { %s359_s17 = scalar_lea.hbm %s447_s3, 1024 }
 0x115   :  { %p360_p7 = scmp.ne.s32.totalorder %s447_s3, %s359_s17  ;;  %p363_p8 = scmp.lt.u32.totalorder %s359_s17, %s447_s3 }
 0x117   :  { %p365_p9 = pnand %p363_p8, %p360_p7 }
 0x119   :  { %368 = shalt.err (!%p365_p9)
}
 0x11a   :  { %s383_s22 = smov 256   ;;  %s384_s23 = smov 16  }
 0x11b   :  { %252 = dma.vmem_to_hbm [thread:$0]  %s247_s14, 1024, %s447_s3, [#allocation5], %s383_s22, %s383_s22, %s384_s23  }
 0x11c   :  { %373 = dma.done.wait [#allocation5], 1024  }
 0x11d   :  { %374 = vsyncadd [#allocation5], 4294966272 }
 0x11e   :  { %256 = vsyncpa [#allocation4], 1 }
 0x11f   :  { %257 = vsyncpa [#allocation7], 1 }
 0x120   :  { %258 = vsyncpa [#allocation5], 1 }

</bundles_post_ra>
